<compile_context>
chip_gen: v7x
topology: tpu7x:2x2x1
jax: 0.10.0
libtpu: 0.0.40
codegen_flags: <defaults>
</compile_context>

<pallas_src>
import functools

import jax
import jax.numpy as jnp
from jax.experimental import pallas as pl
from jax.experimental.pallas import tpu as pltpu


# Conservative budgets that fit every generation (v7x has 64 MiB VMEM per TC).
_VMEM_TILE_BUDGET = 44 * 1024 * 1024
_VMEM_LIMIT_CAP = 56 * 1024 * 1024


def _round_up(x: int, m: int) -> int:
    return ((x + m - 1) // m) * m


def _cdiv(a: int, b: int) -> int:
    return -(-a // b)


# ---------------------------------------------------------------------------
# Kernels
# ---------------------------------------------------------------------------
def _fused_linear_kernel(x_ref, wt_ref, b_ref, o_ref, *, compute_dtype):
    """One M tile: y = x @ W_t + b, with W_t and b fully VMEM-resident."""
    x = x_ref[...]
    if compute_dtype is not None:
        x = x.astype(compute_dtype)        # cast in-kernel: x read from HBM once
    o_ref[...] = (
        jnp.dot(x, wt_ref[...], preferred_element_type=jnp.float32) + b_ref[...]
    ).astype(o_ref.dtype)


def _tiled_linear_kernel(x_ref, wt_ref, b_ref, o_ref, *, compute_dtype):
    """(M, N, K) tiled fallback: accumulate straight into the f32 output block."""
    k = pl.program_id(2)
    x = x_ref[...]
    if compute_dtype is not None:
        x = x.astype(compute_dtype)
    part = jnp.dot(x, wt_ref[...], preferred_element_type=jnp.float32)

    @pl.when(k == 0)
    def _():
        o_ref[...] = part + b_ref[...]      # fold bias into the first K step

    @pl.when(k > 0)
    def _():
        o_ref[...] += part


# ---------------------------------------------------------------------------
# Wrapper
# ---------------------------------------------------------------------------
def _pick_m_tiles(batch: int, tm_max: int):
    nm = max(1, _cdiv(batch, tm_max))
    if nm == 1 and batch >= 256:
        nm = 2      # give v7x's second TensorCore a "parallel" M tile to shard
    tm = _round_up(_cdiv(batch, nm), 8)
    return nm, tm


@functools.partial(
    jax.jit,
    static_argnames=("tm_max", "tn_max", "tk_max", "compute_dtype",
                     "max_weight_vmem_bytes"),
)
def svm_mimic_forward(x, weights, intercept, *, tm_max=512, tn_max=256,
                      tk_max=512, compute_dtype=None,
                      max_weight_vmem_bytes=20 * 1024 * 1024):
    """Pallas equivalent of SVMMimic.forward: y = x @ weights.T + intercept.

    x        : (batch, in_features)        float32
    weights  : (out_features, in_features) float32 (nn.Linear.weight layout)
    intercept: (out_features,)             float32 (nn.Linear.bias)
    returns  : (batch, out_features)       float32

    compute_dtype: optional MXU input dtype (e.g. jnp.bfloat16 -- beneficial on
                   v5e / v6e / v7x alike); accumulation and bias stay float32.
    """
    batch, in_features = x.shape
    out_features, in_features_w = weights.shape
    assert in_features == in_features_w
    assert intercept.shape == (out_features,)

    x_itemsize = jnp.dtype(x.dtype).itemsize
    w_dtype = compute_dtype if compute_dtype is not None else jnp.float32
    w_itemsize = jnp.dtype(w_dtype).itemsize

    k_pad = _round_up(in_features, 128)
    n_pad = _round_up(out_features, 128)
    wt_bytes = k_pad * n_pad * w_itemsize

    # ---- choose the execution path (all decisions are static) ---------------
    use_fused = wt_bytes + n_pad * 4 <= max_weight_vmem_bytes
    if use_fused:
        nm, tm = _pick_m_tiles(batch, tm_max)

        def fused_vmem_need(tm_):
            return (wt_bytes + n_pad * 4                  # resident W_t + bias
                    + 2 * tm_ * k_pad * x_itemsize        # double-buffered x
                    + 2 * tm_ * n_pad * 4)                # double-buffered out

        while fused_vmem_need(tm) > _VMEM_TILE_BUDGET and tm > 8:
            tm = max(8, _round_up(tm // 2, 8))
            nm = _cdiv(batch, tm)
        use_fused = fused_vmem_need(tm) <= _VMEM_TILE_BUDGET

    if use_fused:
        k_final, n_final = k_pad, n_pad
        m_pad = nm * tm
        vmem_need = fused_vmem_need(tm)
    else:
        tn = min(_round_up(tn_max, 128), n_pad)
        tk = min(_round_up(tk_max, 128), k_pad)
        n_final = _round_up(out_features, tn)
        k_final = _round_up(in_features, tk)
        nm, tm = _pick_m_tiles(batch, tm_max)
        m_pad = nm * tm
        vmem_need = (2 * tm * tk * x_itemsize + 2 * tk * tn * w_itemsize
                     + 2 * tn * 4 + 2 * tm * tn * 4)

    # ---- W / bias: tiny & static, so wrapper-side transpose + pad + cast is
    #      free relative to streaming x ---------------------------------------
    w_t = weights.astype(w_dtype).T                          # (K, N), MXU-ready
    if (k_final, n_final) != (in_features, out_features):
        w_t = jnp.pad(w_t, ((0, k_final - in_features),
                            (0, n_final - out_features)))
    b_p = intercept.astype(jnp.float32).reshape(1, out_features)
    if n_final != out_features:
        b_p = jnp.pad(b_p, ((0, 0), (0, n_final - out_features)))

    # ---- x: only copied when padding is actually required -------------------
    x_in = x
    if (m_pad, k_final) != (batch, in_features):
        x_in = jnp.pad(x, ((0, m_pad - batch), (0, k_final - in_features)))

    vmem_limit = int(min(_VMEM_LIMIT_CAP,
                         max(4 * 1024 * 1024, vmem_need + 2 * 1024 * 1024)))

    if use_fused:
        cost = pl.CostEstimate(
            flops=int(2 * m_pad * n_final * k_final + m_pad * n_final),
            transcendentals=0,
            bytes_accessed=int(m_pad * k_final * x_itemsize    # x read once
                               + wt_bytes                      # W read once
                               + n_final * 4                   # bias read once
                               + m_pad * n_final * 4))         # y written once
        out_p = pl.pallas_call(
            functools.partial(_fused_linear_kernel, compute_dtype=compute_dtype),
            out_shape=jax.ShapeDtypeStruct((m_pad, n_final), jnp.float32),
            grid_spec=pltpu.PrefetchScalarGridSpec(
                num_scalar_prefetch=0,
                grid=(nm,),
                in_specs=[
                    pl.BlockSpec((tm, k_final), lambda i: (i, 0)),
                    pl.BlockSpec((k_final, n_final), lambda i: (0, 0)),   # resident W
                    pl.BlockSpec((1, n_final), lambda i: (0, 0)),         # resident b
                ],
                out_specs=pl.BlockSpec((tm, n_final), lambda i: (i, 0)),
            ),
            compiler_params=pltpu.CompilerParams(
                dimension_semantics=("parallel",),
                vmem_limit_bytes=vmem_limit,
            ),
            cost_estimate=cost,
        )(x_in, w_t, b_p)
    else:
        nn_t, nk_t = n_final // tn, k_final // tk
        cost = pl.CostEstimate(
            flops=int(2 * m_pad * n_final * k_final + m_pad * n_final),
            transcendentals=0,
            bytes_accessed=int(m_pad * k_final * x_itemsize * nn_t   # x per N tile
                               + k_final * n_final * w_itemsize * nm  # W per M tile
                               + n_final * 4 * nm
                               + m_pad * n_final * 4))
        out_p = pl.pallas_call(
            functools.partial(_tiled_linear_kernel, compute_dtype=compute_dtype),
            out_shape=jax.ShapeDtypeStruct((m_pad, n_final), jnp.float32),
            grid_spec=pltpu.PrefetchScalarGridSpec(
                num_scalar_prefetch=0,
                grid=(nm, nn_t, nk_t),
                in_specs=[
                    pl.BlockSpec((tm, tk), lambda i, j, k: (i, k)),
                    pl.BlockSpec((tk, tn), lambda i, j, k: (k, j)),
                    pl.BlockSpec((1, tn), lambda i, j, k: (0, j)),
                ],
                out_specs=pl.BlockSpec((tm, tn), lambda i, j, k: (i, j)),
            ),
            compiler_params=pltpu.CompilerParams(
                dimension_semantics=("parallel", "parallel", "arbitrary"),
                vmem_limit_bytes=vmem_limit,
            ),
            cost_estimate=cost,
        )(x_in, w_t, b_p)

    if (m_pad, n_final) != (batch, out_features):
        out_p = out_p[:batch, :out_features]
    return out_p


if __name__ == "__main__":
    key = jax.random.PRNGKey(0)

    # --- Small demo shapes consistent with the module (fused / resident-W) ---
    batch, in_features, out_features = 8, 32, 16
    kx, kw, kb = jax.random.split(key, 3)
    x = jax.random.normal(kx, (batch, in_features), dtype=jnp.float32)
    weights = jax.random.normal(kw, (out_features, in_features), dtype=jnp.float32)
    intercept = jax.random.normal(kb, (out_features,), dtype=jnp.float32)

    out = jax.block_until_ready(svm_mimic_forward(x, weights, intercept))
    ref = x @ weights.T + intercept
    assert out.shape == (batch, out_features)
    assert jnp.allclose(out, ref, atol=1e-5, rtol=1e-5)

    # --- Non-aligned shapes: exercises bounded M padding and >=2 M tiles -----
    batch2, in2, out2 = 300, 200, 70
    k2x, k2w, k2b = jax.random.split(jax.random.PRNGKey(1), 3)
    x2 = jax.random.normal(k2x, (batch2, in2), dtype=jnp.float32)
    w2 = jax.random.normal(k2w, (out2, in2), dtype=jnp.float32)
    b2 = jax.random.normal(k2b, (out2,), dtype=jnp.float32)

    out2_ = jax.block_until_ready(svm_mimic_forward(x2, w2, b2))
    ref2 = x2 @ w2.T + b2
    assert out2_.shape == (batch2, out2)
    assert jnp.allclose(out2_, ref2, atol=1e-4, rtol=1e-4)

    # --- Force the tiled (M, N, K) fallback path (output-resident accum) -----
    out3_ = jax.block_until_ready(
        svm_mimic_forward(x2, w2, b2, max_weight_vmem_bytes=0))
    assert out3_.shape == (batch2, out2)
    assert jnp.allclose(out3_, ref2, atol=1e-4, rtol=1e-4)

    print("KERNEL_OK")
</pallas_src>

<mosaic_0001>
module attributes {stable_mosaic.version = 11 : i64} {
  func.func @_fused_linear_kernel(%arg0: i32, %arg1: memref<8x128xf32, #tpu.memory_space<vmem>>, %arg2: memref<128x128xf32, #tpu.memory_space<vmem>>, %arg3: memref<1x128xf32, #tpu.memory_space<vmem>>, %arg4: memref<8x128xf32, #tpu.memory_space<vmem>>) attributes {dimension_semantics = [#tpu.dimension_semantics<parallel>], iteration_bounds = array<i64: 1>, scalar_prefetch = 0 : i64, scratch_operands = 0 : i64, tpu.core_type = #tpu.core_type<tc>, window_params = [{transform_indices = @transform_0, window_bounds = array<i64: 8, 128>}, {pipeline_mode = #tpu.pipeline_mode<synchronous>, transform_indices = @transform_1, window_bounds = array<i64: 128, 128>}, {pipeline_mode = #tpu.pipeline_mode<synchronous>, transform_indices = @transform_2, window_bounds = array<i64: 1, 128>}, {transform_indices = @transform_3, window_bounds = array<i64: 8, 128>}]} {
    %c0 = arith.constant 0 : index
    %c0_0 = arith.constant 0 : index
    %0 = vector.load %arg1[%c0, %c0_0] : memref<8x128xf32, #tpu.memory_space<vmem>>, vector<8x128xf32>
    %c0_1 = arith.constant 0 : index
    %c0_2 = arith.constant 0 : index
    %1 = vector.load %arg2[%c0_1, %c0_2] : memref<128x128xf32, #tpu.memory_space<vmem>>, vector<128x128xf32>
    %cst = arith.constant dense<0.000000e+00> : vector<8x128xf32>
    %2 = tpu.matmul %0, %1, %cst {dimension_numbers = #tpu.dot_dimension_numbers<[1], [0], [0], [1], [0, 0, 1, 1], [], []>} : vector<8x128xf32>, vector<128x128xf32>, vector<8x128xf32> -> vector<8x128xf32>
    %c0_3 = arith.constant 0 : index
    %c0_4 = arith.constant 0 : index
    %3 = vector.load %arg3[%c0_3, %c0_4] : memref<1x128xf32, #tpu.memory_space<vmem>>, vector<1x128xf32>
    %4 = vector.broadcast %3 : vector<1x128xf32> to vector<8x128xf32>
    %5 = arith.addf %2, %4 : vector<8x128xf32>
    %c0_5 = arith.constant 0 : index
    %c0_6 = arith.constant 0 : index
    %6 = vector.load %arg4[%c0_5, %c0_6] : memref<8x128xf32, #tpu.memory_space<vmem>>, vector<8x128xf32>
    tpu.vector_store %arg4[%c0_5, %c0_6], %5 {strides = array<i32>} : memref<8x128xf32, #tpu.memory_space<vmem>>, vector<8x128xf32>,
    return
  }
  func.func @transform_0(%arg0: i32) -> (i32, i32) {
    %c0_i32 = arith.constant 0 : i32
    %c0_i32_0 = arith.constant 0 : i32
    return %arg0, %c0_i32 : i32, i32
  }
  func.func @transform_1(%arg0: i32) -> (i32, i32) {
    %c0_i32 = arith.constant 0 : i32
    %c0_i32_0 = arith.constant 0 : i32
    %c0_i32_1 = arith.constant 0 : i32
    return %c0_i32, %c0_i32_0 : i32, i32
  }
  func.func @transform_2(%arg0: i32) -> (i32, i32) {
    %c0_i32 = arith.constant 0 : i32
    %c0_i32_0 = arith.constant 0 : i32
    %c0_i32_1 = arith.constant 0 : i32
    return %c0_i32, %c0_i32_0 : i32, i32
  }
  func.func @transform_3(%arg0: i32) -> (i32, i32) {
    %c0_i32 = arith.constant 0 : i32
    %c0_i32_0 = arith.constant 0 : i32
    return %arg0, %c0_i32 : i32, i32
  }
}

</mosaic_0001>

<bundles_post_ra>
// kernel: svm_mimic_forward.1
= control target key start
LH: loop header
LB: loop body
LE: loop exit
PB: predicated region body
PF: predicated region fallthrough
CT: control target
= control target key end

     0   :  { %v229_v3 = vmov 0.0|0.0   ;;  %vm230_vm0 = vmmov 0   ;;  %v231_v6 = vmov 0.0   ;;  %s319_s0 = inlined_call_operand.vmem [shape: f32[8,128], index: 0, kind: input, shape index: {}]   ;;  %s320_s1 = inlined_call_operand.vmem [shape: f32[128,128], index: 1, kind: input, shape index: {}]   ;;  %s321_s2 = inlined_call_operand.vmem [shape: f32[1,128], index: 2, kind: input, shape index: {}]   ;;  %s322_s3 = inlined_call_operand.hbm [shape: f32[8,128], index: 3, kind: output, shape index: {}]  }
   0x1   :  { %v16_v0 = vld [vmem:[%s320_s1] sm:$0xff]  ;;  %v17_v1 = vld [vmem:[%s320_s1 + $0x8] sm:$0xff]  ;;  %v18_v2 = vld [vmem:[%s320_s1 + $0x10] sm:$0xff]  ;;  %177 = vmatprep.subr.bf16.mxu0 %v229_v3  ;;  %174 = vmatprep.mubr.msk.f32.mxu0 %vm230_vm0, %v231_v6 }
   0x2   :  { %v178_v4 = vpack.c.bf16 %v17_v1, %v16_v0  ;;  %v19_v5 = vld [vmem:[%s320_s1 + $0x18] sm:$0xff]  ;;  %v20_v8 = vld [vmem:[%s320_s1 + $0x20] sm:$0xff]  ;;  %v21_v9 = vld [vmem:[%s320_s1 + $0x28] sm:$0xff] }
   0x3   :  { %v181_v7 = vpack.c.bf16 %v19_v5, %v18_v2 }
   0x4   :  { %179 = vmatpush3.bf16.msra.mxu0 %v178_v4 }
   0x5   :  { %180 = vmatprep.subr.bf16.mxu0 %v229_v3 }
   0x6   :  { %8 = vsyncpa [#allocation3], 0  ;;  %v184_v10 = vpack.c.bf16 %v21_v9, %v20_v8  ;;  %v22_v11 = vld [vmem:[%s320_s1 + $0x30] sm:$0xff]  ;;  %v23_v12 = vld [vmem:[%s320_s1 + $0x38] sm:$0xff]  ;;  %s232_s21 = smov [#allocation2]  }
   0x7   :  { %v187_v13 = vpack.c.bf16 %v23_v12, %v22_v11  ;;  %v24_v14 = vld [vmem:[%s320_s1 + $0x40] sm:$0xff]  ;;  %v25_v15 = vld [vmem:[%s320_s1 + $0x48] sm:$0xff]  ;;  %v26_v17 = vld [vmem:[%s320_s1 + $0x50] sm:$0xff]  ;;  %s116_s22 = sshll.u32 %s232_s21, 4  ;;  %s117_s22 = int_to_ptr.vmem [resolvable:$true] %s116_s22 }
   0x8   :  { %182 = vmatpush3.bf16.msra.mxu0 %v181_v7  ;;  %v190_v16 = vpack.c.bf16 %v25_v15, %v24_v14  ;;  %v27_v18 = vld [vmem:[%s320_s1 + $0x58] sm:$0xff]  ;;  %v28_v20 = vld [vmem:[%s320_s1 + $0x60] sm:$0xff]  ;;  %v29_v21 = vld [vmem:[%s320_s1 + $0x68] sm:$0xff]  ;;  %p210_p1 = scmp.lt.s32.totalorder %s117_s22, %s117_s22 }
   0x9   :  { %183 = vmatprep.subr.bf16.mxu0 %v229_v3  ;;  %v193_v19 = vpack.c.bf16 %v27_v18, %v26_v17  ;;  %v196_v22 = vpack.c.bf16 %v29_v21, %v28_v20  ;;  %v30_v23 = vld [vmem:[%s320_s1 + $0x70] sm:$0xff]  ;;  %v31_v24 = vld [vmem:[%s320_s1 + $0x78] sm:$0xff]  ;;  %v15_v26 = vld [vmem:[%s319_s0] sm:$0xff]  ;;  %s205_s1 = scalar_lea.vmem %s117_s22, 128 }
   0xa   :  { %v199_v25 = vpack.c.bf16 %v31_v24, %v30_v23  ;;  %v124_v27 = vld [vmem:[%s321_s2] ss:$0 sm:$0xff]  ;;  %p206_p0 = scmp.ne.s32.totalorder %s117_s22, %s205_s1  ;;  %p211_p2 = scmp.lt.s32.totalorder %s205_s1, %s205_s1 }
   0xc   :  { %185 = vmatpush3.bf16.msra.mxu0 %v184_v10  ;;  %p212_p3 = por %p211_p2, %p210_p1 }
   0xd   :  { %186 = vmatprep.subr.bf16.mxu0 %v229_v3 }
   0xe   :  { %p213_p4 = pnand %p212_p3, %p206_p0 }
  0x10   :  { %188 = vmatpush3.bf16.msra.mxu0 %v187_v13 }
  0x11   :  { %189 = vmatprep.subr.bf16.mxu0 %v229_v3 }
  0x14   :  { %191 = vmatpush3.bf16.msra.mxu0 %v190_v16 }
  0x15   :  { %192 = vmatprep.subr.bf16.mxu0 %v229_v3 }
  0x18   :  { %194 = vmatpush3.bf16.msra.mxu0 %v193_v19 }
  0x19   :  { %195 = vmatprep.subr.bf16.mxu0 %v229_v3 }
  0x1c   :  { %197 = vmatpush3.bf16.msra.mxu0 %v196_v22 }
  0x1d   :  { %198 = vmatprep.subr.bf16.mxu0 %v229_v3 }
  0x20   :  { %200 = vmatpush3.bf16.msra.mxu0 %v199_v25 }
  0x23   :  { %175 = vmatmul.mubr.f32.vlgmr.msra.gmra.mrb[0].mxu0 %v15_v26 }
  0xf6   :  { %v105_v28 = vpop.f32.mrb[0].mxu0 }
  0xf7   :  { %v106_v29 = vadd.f32 %v124_v27, %v105_v28  ;;  %v176_v30 = vpop.f32.mrb[1].mxu0 }
  0xf9   :  { %109 = vst [vmem:[#allocation2] sm:$0xff] %v106_v29 }
  0xfa   :  { %216 = shalt.err (!%p213_p4)
}
  0xfb   :  { %s217_s24 = scalar_lea.hbm %s322_s3, 128 }
  0xfc   :  { %p218_p5 = scmp.ne.s32.totalorder %s322_s3, %s217_s24  ;;  %p221_p6 = scmp.lt.u32.totalorder %s217_s24, %s322_s3 }
  0xfe   :  { %p223_p7 = pnand %p221_p6, %p218_p5 }
 0x100   :  { %226 = shalt.err (!%p223_p7)
}
 0x101   :  { %119 = dma.vmem_to_hbm [thread:$0]  %s117_s22, 128, %s322_s3, [#allocation3]  }
 0x102   :  { %227 = dma.done.wait [#allocation3], 128  }
 0x103   :  { %228 = vsyncadd [#allocation3], 4294967168 }
 0x104   :  { %123 = vsyncpa [#allocation3], 1 }

</bundles_post_ra>
